<compile_context>
chip_gen: v7x
topology: tpu7x:2x2x1
jax: 0.10.0
libtpu: 0.0.40
codegen_flags: <defaults>
</compile_context>

<pallas_src>
import functools

import jax
import jax.numpy as jnp
from jax.experimental import pallas as pl
from jax.experimental.pallas import tpu as pltpu

LANE = 128        # vreg lane width
SUBLANE = 8       # f32 sublane count
ROW_ALIGN = 16    # bf16 packs 16 sublanes per vreg -> align slab row segments


def _round_up(x, m):
    return ((x + m - 1) // m) * m


# ---------------------------------------------------------------------------
# Parameter packing: list[(W, b)] -> bf16 weight slab + f32 bias slab.
# Weight slab rows:
#   [0 : round_up(dim+1, 16)]            layer-0 weight (x rows, then the t row)
#   [...: + (L-1) * P]                   layers 1..L-1 weights, P rows each
# Bias slab: one f32 row per layer (padded to 8 rows).
# All segments zero padded to P = round_up(max(out_dims), lane_multiple) cols,
# so padding lanes stay exactly zero through every layer (ReLU(0) == 0).
# ---------------------------------------------------------------------------
def pack_params(params, dim, *, lane_multiple=None):
    n_layers = len(params)
    out_dims = [int(w.shape[1]) for w, _ in params]
    max_out = max(out_dims)
    if lane_multiple is None:
        # v6e/v7x MXUs are 256 wide; only pad to 256 when the model is big
        # enough that it isn't pure wasted FLOPs (and v5e prefers 128 anyway).
        lane_multiple = 256 if max_out >= 256 else LANE
    pmax = _round_up(max_out, lane_multiple)
    rows0 = _round_up(dim + 1, ROW_ALIGN)
    total_rows = rows0 + (n_layers - 1) * pmax

    w_slab = jnp.zeros((total_rows, pmax), jnp.bfloat16)
    w0, _ = params[0]
    assert w0.shape[0] == dim + 1, "layer-0 weight must have in_dim = dim + 1"
    w_slab = w_slab.at[0:dim + 1, 0:out_dims[0]].set(w0.astype(jnp.bfloat16))
    for l in range(1, n_layers):
        w, _ = params[l]
        off = rows0 + (l - 1) * pmax
        w_slab = w_slab.at[off:off + w.shape[0], 0:w.shape[1]].set(
            w.astype(jnp.bfloat16))

    bias_rows = _round_up(n_layers, SUBLANE)
    b_slab = jnp.zeros((bias_rows, pmax), jnp.float32)
    for l, (_, b) in enumerate(params):
        b_slab = b_slab.at[l, 0:b.shape[0]].set(b.astype(jnp.float32))

    meta = dict(n_layers=n_layers, rows0=rows0, pmax=pmax)
    return w_slab, b_slab, meta


def _mlp_kernel(dim, n_layers, rows0, pmax, out_cols,
                x_ref, t_ref, w_ref, b_ref, o_ref):
    x = x_ref[...]                                       # (TM, dim) f32
    t = t_ref[...].astype(jnp.float32)                   # (TM, 1)   f32

    w0 = w_ref[0:rows0, :]                               # (rows0, P) bf16

    # Layer 0: fused "concat([x, t]) @ W0 + b0"; bf16 MXU operands, f32 accum,
    # f32 elementwise (bias, t-row, ReLU).
    h = jnp.dot(x.astype(jnp.bfloat16), w0[:dim, :],
                preferred_element_type=jnp.float32)
    h = h + t * w0[dim:dim + 1, :].astype(jnp.float32) + b_ref[0:1, :]
    if n_layers > 1:
        h = jnp.maximum(h, 0.0)                          # ReLU on hidden layers only

    # Remaining layers: lane-dense (TM, P) @ (P, P) bf16 matmuls, f32 accum.
    for l in range(1, n_layers):
        off = rows0 + (l - 1) * pmax                     # multiple of 16 (aligned)
        w = w_ref[off:off + pmax, :]                     # (P, P) bf16, zero padded
        h = jnp.dot(h.astype(jnp.bfloat16), w,
                    preferred_element_type=jnp.float32) + b_ref[l:l + 1, :]
        if l < n_layers - 1:
            h = jnp.maximum(h, 0.0)

    # Lane-dense store (padding lanes are exact zeros).
    o_ref[...] = h[:, :out_cols].astype(o_ref.dtype)


def mlp_uncond_forward(x, t, w_slab, b_slab, *, meta, dim,
                       block_rows=1024, lane_dense_out=True):
    """x: [nbatch, dim], t: [nbatch]; w_slab/b_slab from pack_params."""
    nbatch = x.shape[0]
    assert x.shape == (nbatch, dim)
    t2 = t.reshape(nbatch, 1).astype(x.dtype)            # no concat: fused in-kernel

    n_layers, rows0, pmax = meta["n_layers"], meta["rows0"], meta["pmax"]

    # Lane-dense writeback: store round_up(dim, 128) columns (unmasked vst) and
    # slice back to dim in the wrapper.
    out_cols = _round_up(dim, LANE) if lane_dense_out else dim

    # Batch tile: as large as is cheap, but always >= 2 grid steps so the
    # "parallel" axis actually spans both TensorCores on v7x.
    tm = min(block_rows, _round_up(nbatch, SUBLANE))
    if nbatch > SUBLANE and pl.cdiv(nbatch, tm) < 2:
        tm = _round_up(pl.cdiv(nbatch, 2), SUBLANE)
    grid = (pl.cdiv(nbatch, tm),)

    kernel = functools.partial(_mlp_kernel, dim, n_layers, rows0, pmax, out_cols)

    # Explicit VMEM budget (v5e scoped default 16 MiB; v7x physical 64 MiB).
    lane_pad = lambda n: _round_up(max(int(n), 1), LANE)
    itemsize = x.dtype.itemsize
    vmem_bytes = (
        2 * tm * lane_pad(dim) * itemsize            # x blocks (double-buffered)
        + 2 * tm * LANE * itemsize                   # t blocks
        + 2 * tm * lane_pad(out_cols) * itemsize     # out blocks
        + w_slab.size * w_slab.dtype.itemsize        # resident weights (single copy)
        + b_slab.size * b_slab.dtype.itemsize        # resident biases
        + 2 * tm * pmax * 4                          # live f32 activation + matmul result
    )
    vmem_limit = int(min(max(2 * vmem_bytes, 8 << 20), 64 << 20))

    flops = 2 * nbatch * (rows0 * pmax + (n_layers - 1) * pmax * pmax)
    bytes_accessed = int(x.size * itemsize + t2.size * itemsize
                         + w_slab.size * w_slab.dtype.itemsize
                         + b_slab.size * b_slab.dtype.itemsize
                         + nbatch * out_cols * itemsize)

    out = pl.pallas_call(
        kernel,
        grid=grid,
        in_specs=[
            pl.BlockSpec((tm, dim), lambda i: (i, 0)),   # x: batch-tiled, pipelined
            pl.BlockSpec((tm, 1), lambda i: (i, 0)),     # t: batch-tiled, pipelined
            # Parameters: whole-array VMEM residents -> one DMA, not double-buffered.
            pl.BlockSpec(memory_space=pltpu.MemorySpace.VMEM),
            pl.BlockSpec(memory_space=pltpu.MemorySpace.VMEM),
        ],
        out_specs=pl.BlockSpec((tm, out_cols), lambda i: (i, 0)),
        out_shape=jax.ShapeDtypeStruct((nbatch, out_cols), x.dtype),
        compiler_params=pltpu.CompilerParams(
            dimension_semantics=("parallel",),           # split batch across TCs (v7x)
            vmem_limit_bytes=vmem_limit),
        cost_estimate=pl.CostEstimate(
            flops=flops, transcendentals=0, bytes_accessed=bytes_accessed),
    )(x, t2, w_slab, b_slab)

    return out[:, :dim] if out_cols != dim else out


class MLPUncondPallas:
    """Packs parameters once; __call__(x, t) runs the Pallas forward."""

    def __init__(self, params, dim, *, block_rows=1024, lane_dense_out=True,
                 lane_multiple=None):
        self.dim = int(dim)
        self.w_slab, self.b_slab, self.meta = pack_params(
            params, self.dim, lane_multiple=lane_multiple)
        self._fwd = jax.jit(functools.partial(
            mlp_uncond_forward, meta=self.meta, dim=self.dim,
            block_rows=block_rows, lane_dense_out=lane_dense_out))

    def __call__(self, x, t):
        return self._fwd(x, t, self.w_slab, self.b_slab)


def init_params(key, dim, hidden_dims):
    """Deterministic init matching torch.nn.Linear shapes (stored transposed)."""
    params = []
    in_dim = dim + 1
    dims = list(hidden_dims) + [dim]
    for out_dim in dims:
        key, kw, kb = jax.random.split(key, 3)
        bound = 1.0 / jnp.sqrt(in_dim)
        w = jax.random.uniform(kw, (in_dim, out_dim), jnp.float32, -bound, bound)
        b = jax.random.uniform(kb, (out_dim,), jnp.float32, -bound, bound)
        params.append((w, b))
        in_dim = out_dim
    return params


def mlp_uncond_reference(x, t, params):
    """Plain-JAX f32 reference of the PyTorch forward."""
    h = jnp.concatenate([x, t[:, None]], axis=-1)
    n = len(params)
    for i, (w, b) in enumerate(params):
        h = h @ w + b
        if i < n - 1:
            h = jnp.maximum(h, 0.0)
    return h


def mlp_uncond_reference_bf16(x, t, params):
    """Reference that mirrors the kernel's dtype discipline exactly
    (bf16 matmul operands, f32 accumulation, f32 elementwise)."""
    bf = jnp.bfloat16
    dim = x.shape[1]
    n = len(params)
    w0, b0 = params[0]
    h = jnp.dot(x.astype(bf), w0[:dim].astype(bf),
                preferred_element_type=jnp.float32)
    h = h + t[:, None] * w0[dim:dim + 1].astype(bf).astype(jnp.float32) + b0
    if n > 1:
        h = jnp.maximum(h, 0.0)
    for i in range(1, n):
        w, b = params[i]
        h = jnp.dot(h.astype(bf), w.astype(bf),
                    preferred_element_type=jnp.float32) + b
        if i < n - 1:
            h = jnp.maximum(h, 0.0)
    return h


if __name__ == "__main__":
    key = jax.random.PRNGKey(0)
    kx, kt, kp = jax.random.split(key, 3)

    nbatch, dim = 256, 4
    hidden_dims = [32, 32]

    x = jax.random.normal(kx, (nbatch, dim), jnp.float32)
    t = jax.random.normal(kt, (nbatch,), jnp.float32)
    params = init_params(kp, dim, hidden_dims)

    model = MLPUncondPallas(params, dim)          # params packed once, reused

    out = jax.block_until_ready(model(x, t))      # grid=(2,): both TCs get work
    assert out.shape == (nbatch, dim)

    ref_q = mlp_uncond_reference_bf16(x, t, params)
    ref_f = mlp_uncond_reference(x, t, params)
    assert jnp.allclose(out, ref_q, atol=1e-3, rtol=1e-3), float(
        jnp.max(jnp.abs(out - ref_q)))
    assert jnp.allclose(out, ref_f, atol=5e-2, rtol=5e-2), float(
        jnp.max(jnp.abs(out - ref_f)))

    # Ragged batch (not a multiple of the tile) exercises the masked final tile.
    nb2 = 200
    x2 = jax.random.normal(kx, (nb2, dim), jnp.float32)
    t2 = jax.random.normal(kt, (nb2,), jnp.float32)
    out2 = jax.block_until_ready(model(x2, t2))
    ref2 = mlp_uncond_reference_bf16(x2, t2, params)
    assert out2.shape == (nb2, dim)
    assert jnp.allclose(out2, ref2, atol=1e-3, rtol=1e-3), float(
        jnp.max(jnp.abs(out2 - ref2)))

    print("KERNEL_OK")
</pallas_src>

<mosaic_0001>
module attributes {stable_mosaic.version = 11 : i64} {
  func.func @_mlp_kernel(%arg0: i32, %arg1: memref<128x4xf32, #tpu.memory_space<vmem>>, %arg2: memref<128x1xf32, #tpu.memory_space<vmem>>, %arg3: memref<272x128xbf16, #tpu.memory_space<vmem>>, %arg4: memref<8x128xf32, #tpu.memory_space<vmem>>, %arg5: memref<128x128xf32, #tpu.memory_space<vmem>>) attributes {dimension_semantics = [#tpu.dimension_semantics<parallel>], iteration_bounds = array<i64: 2>, scalar_prefetch = 0 : i64, scratch_operands = 0 : i64, tpu.core_type = #tpu.core_type<tc>, window_params = [{transform_indices = @transform_0, window_bounds = array<i64: 128, 4>}, {transform_indices = @transform_1, window_bounds = array<i64: 128, 1>}, {pipeline_mode = #tpu.pipeline_mode<synchronous>, transform_indices = @transform_2, window_bounds = array<i64: 272, 128>}, {pipeline_mode = #tpu.pipeline_mode<synchronous>, transform_indices = @transform_3, window_bounds = array<i64: 8, 128>}, {transform_indices = @transform_4, window_bounds = array<i64: 128, 128>}]} {
    %c0 = arith.constant 0 : index
    %c0_0 = arith.constant 0 : index
    %0 = vector.load %arg1[%c0, %c0_0] : memref<128x4xf32, #tpu.memory_space<vmem>>, vector<128x4xf32>
    %c0_1 = arith.constant 0 : index
    %c0_2 = arith.constant 0 : index
    %1 = vector.load %arg2[%c0_1, %c0_2] : memref<128x1xf32, #tpu.memory_space<vmem>>, vector<128x1xf32>
    %c0_3 = arith.constant 0 : index
    %c0_4 = arith.constant 0 : index
    %2 = vector.load %arg3[%c0_3, %c0_4] : memref<272x128xbf16, #tpu.memory_space<vmem>>, vector<16x128xbf16>
    %3 = arith.truncf %0 : vector<128x4xf32> to vector<128x4xbf16>
    %4 = vector.extract_strided_slice %2 {offsets = [0, 0], sizes = [4, 128], strides = [1, 1]} : vector<16x128xbf16> to vector<4x128xbf16>
    %cst = arith.constant dense<0.000000e+00> : vector<128x128xf32>
    %5 = tpu.matmul %3, %4, %cst {dimension_numbers = #tpu.dot_dimension_numbers<[1], [0], [0], [1], [0, 0, 1, 1], [], []>} : vector<128x4xbf16>, vector<4x128xbf16>, vector<128x128xf32> -> vector<128x128xf32>
    %6 = vector.extract_strided_slice %2 {offsets = [4, 0], sizes = [1, 128], strides = [1, 1]} : vector<16x128xbf16> to vector<1x128xbf16>
    %7 = arith.extf %6 : vector<1x128xbf16> to vector<1x128xf32>
    %8 = vector.broadcast %1 : vector<128x1xf32> to vector<128x128xf32>
    %9 = vector.broadcast %7 : vector<1x128xf32> to vector<128x128xf32>
    %10 = arith.mulf %8, %9 : vector<128x128xf32>
    %11 = arith.addf %5, %10 : vector<128x128xf32>
    %c0_5 = arith.constant 0 : index
    %c0_6 = arith.constant 0 : index
    %12 = vector.load %arg4[%c0_5, %c0_6] : memref<8x128xf32, #tpu.memory_space<vmem>>, vector<1x128xf32>
    %13 = vector.broadcast %12 : vector<1x128xf32> to vector<128x128xf32>
    %14 = arith.addf %11, %13 : vector<128x128xf32>
    %cst_7 = arith.constant 0.000000e+00 : f32
    %15 = vector.broadcast %cst_7 : f32 to vector<128x128xf32>
    %16 = arith.maximumf %14, %15 : vector<128x128xf32>
    %c16 = arith.constant 16 : index
    %c0_8 = arith.constant 0 : index
    %17 = vector.load %arg3[%c16, %c0_8] : memref<272x128xbf16, #tpu.memory_space<vmem>>, vector<128x128xbf16>
    %18 = arith.truncf %16 : vector<128x128xf32> to vector<128x128xbf16>
    %cst_9 = arith.constant dense<0.000000e+00> : vector<128x128xf32>
    %19 = tpu.matmul %18, %17, %cst_9 {dimension_numbers = #tpu.dot_dimension_numbers<[1], [0], [0], [1], [0, 0, 1, 1], [], []>} : vector<128x128xbf16>, vector<128x128xbf16>, vector<128x128xf32> -> vector<128x128xf32>
    %c1 = arith.constant 1 : index
    %c0_10 = arith.constant 0 : index
    %20 = vector.load %arg4[%c1, %c0_10] : memref<8x128xf32, #tpu.memory_space<vmem>>, vector<1x128xf32>
    %21 = vector.broadcast %20 : vector<1x128xf32> to vector<128x128xf32>
    %22 = arith.addf %19, %21 : vector<128x128xf32>
    %cst_11 = arith.constant 0.000000e+00 : f32
    %23 = vector.broadcast %cst_11 : f32 to vector<128x128xf32>
    %24 = arith.maximumf %22, %23 : vector<128x128xf32>
    %c144 = arith.constant 144 : index
    %c0_12 = arith.constant 0 : index
    %25 = vector.load %arg3[%c144, %c0_12] : memref<272x128xbf16, #tpu.memory_space<vmem>>, vector<128x128xbf16>
    %26 = arith.truncf %24 : vector<128x128xf32> to vector<128x128xbf16>
    %cst_13 = arith.constant dense<0.000000e+00> : vector<128x128xf32>
    %27 = tpu.matmul %26, %25, %cst_13 {dimension_numbers = #tpu.dot_dimension_numbers<[1], [0], [0], [1], [0, 0, 1, 1], [], []>} : vector<128x128xbf16>, vector<128x128xbf16>, vector<128x128xf32> -> vector<128x128xf32>
    %c2 = arith.constant 2 : index
    %c0_14 = arith.constant 0 : index
    %28 = vector.load %arg4[%c2, %c0_14] : memref<8x128xf32, #tpu.memory_space<vmem>>, vector<1x128xf32>
    %29 = vector.broadcast %28 : vector<1x128xf32> to vector<128x128xf32>
    %30 = arith.addf %27, %29 : vector<128x128xf32>
    %c0_15 = arith.constant 0 : index
    %c0_16 = arith.constant 0 : index
    %31 = vector.load %arg5[%c0_15, %c0_16] : memref<128x128xf32, #tpu.memory_space<vmem>>, vector<128x128xf32>
    tpu.vector_store %arg5[%c0_15, %c0_16], %30 {strides = array<i32>} : memref<128x128xf32, #tpu.memory_space<vmem>>, vector<128x128xf32>,
    return
  }
  func.func @transform_0(%arg0: i32) -> (i32, i32) {
    %c0_i32 = arith.constant 0 : i32
    %c0_i32_0 = arith.constant 0 : i32
    return %arg0, %c0_i32 : i32, i32
  }
  func.func @transform_1(%arg0: i32) -> (i32, i32) {
    %c0_i32 = arith.constant 0 : i32
    %c0_i32_0 = arith.constant 0 : i32
    return %arg0, %c0_i32 : i32, i32
  }
  func.func @transform_2(%arg0: i32) -> (i32, i32) {
    %c0_i32 = arith.constant 0 : i32
    %c0_i32_0 = arith.constant 0 : i32
    %c0_i32_1 = arith.constant 0 : i32
    return %c0_i32, %c0_i32_0 : i32, i32
  }
  func.func @transform_3(%arg0: i32) -> (i32, i32) {
    %c0_i32 = arith.constant 0 : i32
    %c0_i32_0 = arith.constant 0 : i32
    %c0_i32_1 = arith.constant 0 : i32
    return %c0_i32, %c0_i32_0 : i32, i32
  }
  func.func @transform_4(%arg0: i32) -> (i32, i32) {
    %c0_i32 = arith.constant 0 : i32
    %c0_i32_0 = arith.constant 0 : i32
    return %arg0, %c0_i32 : i32, i32
  }
}

</mosaic_0001>

<bundles_post_ra>
// kernel: mlp_uncond_forward.1
= control target key start
LH: loop header
LB: loop body
LE: loop exit
PB: predicated region body
PF: predicated region fallthrough
CT: control target
= control target key end

     0   :  { %s1202_s15 = smov 0   ;;  %s1390_s0 = inlined_call_operand.vmem [shape: f32[256,4], index: 0, kind: input, shape index: {}]   ;;  %s1391_s1 = inlined_call_operand.vmem [shape: f32[256,1], index: 1, kind: input, shape index: {}]   ;;  %s1392_s2 = inlined_call_operand.vmem [shape: bf16[272,128], index: 2, kind: input, shape index: {}]   ;;  %s1393_s3 = inlined_call_operand.vmem [shape: f32[8,128], index: 3, kind: input, shape index: {}]   ;;  %s1394_s4 = inlined_call_operand.vmem [shape: f32[256,128], index: 4, kind: output, shape index: {}]  }
   0x1 LB: > { %s977_s16 = sadd.s32 4294967295, %s1174_s15   ;;  %p981_p0 = scmp.ge.s32.totalorder %s1174_s15, 1  ;;  %s1174_s15 = sphi %s1202_s15, %s14_s15  }
   0x2   : > { %p174_p1 = scmp.lt.s32.totalorder %s1174_s15, 3 }
   0x4   : > { %p175_p2 = pnand %p981_p0, %p174_p1 }
   0x5   : > { %v1213_v0 = vld [vmem:[%s1392_s2] sm:$0xf] (!%p175_p2)  ;;  %vm391_vm0 = vcmask (!%p175_p2), 1041408   ;;  %s982_s19 = sshll.u32 (!%p175_p2), %s977_s16, 4  ;;  %v1176_v2 = vmov (!%p175_p2), 0   ;;  %vm366_vm1 = vcmask (!%p175_p2), 31744   ;;  %v346_v59 = vlaneseq (!%p175_p2) }
   0x6   : > { %178 = sbr.rel (%p175_p2) target bundleno = 708 (0x2c4), region = 36  ;;  %1140 = vmatprep.subr.msk.bf16.mxu0 (!%p175_p2), %vm391_vm0, %v1213_v0  ;;  %v393_v1 = vsel (!%p175_p2), %vm391_vm0, %v1213_v0, 0  ;;  %p206_p3 = scmp.lt.s32.totalorder (!%p175_p2), %s982_s19, 31  ;;  %1150 = vset.pattern.permute.xlu0 (!%p175_p2), %v1176_v2  ;;  %v1152_v30 = vld [vmem:[%s1392_s2 + $0x8] sm:$0xff] (!%p175_p2)   ;;  %v1153_v33 = vld [vmem:[%s1392_s2 + $0x10] sm:$0xff] (!%p175_p2)   ;;  %v1154_v38 = vld [vmem:[%s1392_s2 + $0x18] sm:$0xff] (!%p175_p2)   ;;  %v265_v63 = vunpack.c.l.bf16 (!%p175_p2), %v1213_v0 }
   0x7   : > { %1059 = vmatpush3.bf16.msra.mxu0 (!%p175_p2), %v393_v1  ;;  %1151 = vset.pattern.permute.xlu1 (!%p175_p2), %v1176_v2  ;;  %v1155_v42 = vld [vmem:[%s1392_s2 + $0x20] sm:$0xff] (!%p175_p2)   ;;  %v1156_v45 = vld [vmem:[%s1392_s2 + $0x28] sm:$0xff] (!%p175_p2)   ;;  %v1157_v48 = vld [vmem:[%s1392_s2 + $0x30] sm:$0xff] (!%p175_p2)   ;;  %v347_v61 = vshrl.u32 (!%p175_p2), %v346_v59, 7 }
   0x8   : > { %1076 = vmatprep.subr.bf16.mxu1 (!%p175_p2), %v1152_v30  ;;  %v1158_v49 = vld [vmem:[%s1392_s2 + $0x38] sm:$0xff] (!%p175_p2)   ;;  %v1159_v50 = vld [vmem:[%s1392_s2 + $0x40] sm:$0xff] (!%p175_p2)   ;;  %v1160_v51 = vld [vmem:[%s1392_s2 + $0x48] sm:$0xff] (!%p175_p2)  }
   0x9   : > { %1077 = vmatpush3.bf16.msra.mxu1 (!%p175_p2), %v1152_v30  ;;  %v1161_v52 = vld [vmem:[%s1392_s2 + $0x50] sm:$0xff] (!%p175_p2)   ;;  %1108 = vmatprep.subr.bf16.mxu0 (!%p175_p2), %v1160_v51  ;;  %v1162_v53 = vld [vmem:[%s1392_s2 + $0x58] sm:$0xff] (!%p175_p2)   ;;  %v1163_v54 = vld [vmem:[%s1392_s2 + $0x60] sm:$0xff] (!%p175_p2)   ;;  %v348_v1 = vsub.s32 (!%p175_p2), 4, %v347_v61 }
   0xa   : > { %1078 = vmatprep.subr.bf16.mxu1 (!%p175_p2), %v1153_v33  ;;  %v1164_v55 = vld [vmem:[%s1392_s2 + $0x68] sm:$0xff] (!%p175_p2)   ;;  %v1165_v56 = vld [vmem:[%s1392_s2 + $0x70] sm:$0xff] (!%p175_p2)  }
   0xd   : > { %s1396_s19 = smov (!%p206_p3, %s982_s19), 31  ;;  %1079 = vmatpush3.bf16.msra.mxu1 %v1153_v33 }
   0xe   : > { %s1217_s20 = sshll.u32 %s1396_s19, 3  ;;  %1080 = vmatprep.subr.bf16.mxu1 %v1154_v38 }
   0xf   : > { %s1223_s23 = scalar_lea.vmem %s1390_s0, %s1217_s20  ;;  %s1235_s26 = scalar_lea.vmem %s1391_s1, %s1217_s20 }
  0x10   : > { %v224_v3 = vld [vmem:[%s1223_s23] sm:$0xff]  ;;  %v225_v4 = vld [vmem:[%s1223_s23 + $0x8] sm:$0xff]  ;;  %v226_v5 = vld [vmem:[%s1223_s23 + $0x10] sm:$0xff]  ;;  %s1369_s18 = scalar_lea.vmem %s1394_s4, %s1217_s20 }
  0x11   : > { %v257_v6 = vpack.c.bf16 %v225_v4, %v224_v3  ;;  %v227_v7 = vld [vmem:[%s1223_s23 + $0x18] sm:$0xff]  ;;  %v228_v8 = vld [vmem:[%s1223_s23 + $0x20] sm:$0xff]  ;;  %v229_v9 = vld [vmem:[%s1223_s23 + $0x28] sm:$0xff]  ;;  %1081 = vmatpush3.bf16.msra.mxu1 %v1154_v38  ;;  %v1314_v4 = vrot.slane %v265_v63, %v348_v1 }
  0x12   : > { %v258_v10 = vpack.c.bf16 %v227_v7, %v226_v5  ;;  %v259_v11 = vpack.c.bf16 %v229_v9, %v228_v8  ;;  %v230_v12 = vld [vmem:[%s1223_s23 + $0x30] sm:$0xff]  ;;  %v231_v13 = vld [vmem:[%s1223_s23 + $0x38] sm:$0xff]  ;;  %v240_v14 = vld [vmem:[%s1235_s26] sm:$0xff]  ;;  %1082 = vmatprep.subr.bf16.mxu1 %v1155_v42 }
  0x13   : > { %1060 = vmatprep.mubr.msk.bf16.mxu0 %vm366_vm1, %v257_v6  ;;  %v242_v15 = vld [vmem:[%s1235_s26 + $0x10] sm:$0xff]  ;;  %v232_v16 = vld [vmem:[%s1223_s23 + $0x40] sm:$0xff]  ;;  %v233_v17 = vld [vmem:[%s1223_s23 + $0x48] sm:$0xff]  ;;  %268 = vperm.xlu0 %1150, %v240_v14   ;;  %v260_v20 = vpack.c.bf16 %v231_v13, %v230_v12 }
  0x14   : > { %1061 = vmatmul.mubr.msk.bf16.vlgmr.msra.gmra.mrb[0].mxu0 %vm366_vm1, %v258_v10  ;;  %278 = vperm.xlu1 %1151, %v242_v15   ;;  %v241_v18 = vld [vmem:[%s1235_s26 + $0x8] sm:$0xff]  ;;  %v243_v19 = vld [vmem:[%s1235_s26 + $0x18] sm:$0xff]  ;;  %v261_v21 = vpack.c.bf16 %v233_v17, %v232_v16  ;;  %v244_v22 = vld [vmem:[%s1235_s26 + $0x20] sm:$0xff] }
  0x15   : > { %1064 = vmatprep.mubr.msk.bf16.mxu0 %vm366_vm1, %v259_v11  ;;  %v245_v23 = vld [vmem:[%s1235_s26 + $0x28] sm:$0xff]  ;;  %v234_v24 = vld [vmem:[%s1223_s23 + $0x50] sm:$0xff]  ;;  %v235_v25 = vld [vmem:[%s1223_s23 + $0x58] sm:$0xff]  ;;  %1083 = vmatpush3.bf16.msra.mxu1 %v1155_v42 }
  0x16   : > { %v236_v26 = vld [vmem:[%s1223_s23 + $0x60] sm:$0xff]  ;;  %v237_v27 = vld [vmem:[%s1223_s23 + $0x68] sm:$0xff]  ;;  %v246_v28 = vld [vmem:[%s1235_s26 + $0x30] sm:$0xff]  ;;  %v262_v31 = vpack.c.bf16 %v235_v25, %v234_v24  ;;  %1084 = vmatprep.subr.bf16.mxu1 %v1156_v45  ;;  %1109 = vmatpush3.bf16.msra.mxu0 %v1160_v51 }
  0x17   : > { %273 = vperm.xlu0 %1150, %v241_v18   ;;  %v247_v29 = vld [vmem:[%s1235_s26 + $0x38] sm:$0xff]  ;;  %v263_v32 = vpack.c.bf16 %v237_v27, %v236_v26  ;;  %v248_v34 = vld [vmem:[%s1235_s26 + $0x40] sm:$0xff]  ;;  %v249_v35 = vld [vmem:[%s1235_s26 + $0x48] sm:$0xff]  ;;  %1110 = vmatprep.subr.bf16.mxu0 %v1161_v52 }
  0x18   : > { %283 = vperm.xlu1 %1151, %v243_v19   ;;  %v238_v36 = vld [vmem:[%s1223_s23 + $0x70] sm:$0xff]  ;;  %v239_v37 = vld [vmem:[%s1223_s23 + $0x78] sm:$0xff]  ;;  %v252_v43 = vld [vmem:[%s1235_s26 + $0x60] sm:$0xff] }
  0x19   : > { %v250_v39 = vld [vmem:[%s1235_s26 + $0x50] sm:$0xff]  ;;  %v251_v40 = vld [vmem:[%s1235_s26 + $0x58] sm:$0xff]  ;;  %v264_v41 = vpack.c.bf16 %v239_v37, %v238_v36  ;;  %v253_v44 = vld [vmem:[%s1235_s26 + $0x68] sm:$0xff]  ;;  %1085 = vmatpush3.bf16.msra.mxu1 %v1156_v45 }
  0x1a   : > { %v254_v46 = vld [vmem:[%s1235_s26 + $0x70] sm:$0xff]  ;;  %v255_v47 = vld [vmem:[%s1235_s26 + $0x78] sm:$0xff]  ;;  %1086 = vmatprep.subr.bf16.mxu1 %v1157_v48  ;;  %1111 = vmatpush3.bf16.msra.mxu0 %v1161_v52  ;;  %v1321_v10 = vld [vmem:[%s1393_s3] ss:$0 sm:$0xff] }
  0x1b   : > { %288 = vperm.xlu0 %1150, %v244_v22   ;;  %1112 = vmatprep.subr.bf16.mxu0 %v1162_v53 }
  0x1c   : > { %1065 = vmatmul.mubr.msk.bf16.gmra.mrb[4].mxu0 %vm366_vm1, %v260_v20  ;;  %293 = vperm.xlu1 %1151, %v245_v23  }
  0x1d   : > { %1068 = vmatprep.mubr.msk.bf16.mxu0 %vm366_vm1, %v261_v21  ;;  %1087 = vmatpush3.bf16.msra.mxu1 %v1157_v48 }
  0x1e   : > { %1088 = vmatprep.subr.bf16.mxu1 %v1158_v49  ;;  %1113 = vmatpush3.bf16.msra.mxu0 %v1162_v53 }
  0x1f   : > { %298 = vperm.xlu0 %1150, %v246_v28   ;;  %1114 = vmatprep.subr.bf16.mxu0 %v1163_v54 }
  0x20   : > { %303 = vperm.xlu1 %1151, %v247_v29  }
  0x21   : > { %1089 = vmatpush3.bf16.msra.mxu1 %v1158_v49 }
  0x22   : > { %1090 = vmatprep.subr.bf16.mxu1 %v1159_v50  ;;  %1115 = vmatpush3.bf16.msra.mxu0 %v1163_v54 }
  0x23   : > { %308 = vperm.xlu0 %1150, %v248_v34   ;;  %1116 = vmatprep.subr.bf16.mxu0 %v1164_v55 }
  0x24   : > { %1069 = vmatmul.mubr.msk.bf16.gmra.mrb[8].mxu0 %vm366_vm1, %v262_v31  ;;  %313 = vperm.xlu1 %1151, %v249_v35  }
  0x25   : > { %1072 = vmatprep.mubr.msk.bf16.mxu0 %vm366_vm1, %v263_v32  ;;  %1091 = vmatpush3.bf16.msra.mxu1 %v1159_v50 }
  0x26   : > { %1117 = vmatpush3.bf16.msra.mxu0 %v1164_v55 }
  0x27   : > { %318 = vperm.xlu0 %1150, %v250_v39   ;;  %1118 = vmatprep.subr.bf16.mxu0 %v1165_v56 }
  0x28   : > { %323 = vperm.xlu1 %1151, %v251_v40  }
  0x2a   : > { %1119 = vmatpush3.bf16.msra.mxu0 %v1165_v56 }
  0x2b   : > { %328 = vperm.xlu0 %1150, %v252_v43  }
  0x2c   : > { %1073 = vmatmul.mubr.msk.bf16.gmra.mrb[12].mxu0 %vm366_vm1, %v264_v41  ;;  %333 = vperm.xlu1 %1151, %v253_v44  }
  0x2f   : > { %338 = vperm.xlu0 %1150, %v254_v46  }
  0x30   : > { %343 = vperm.xlu1 %1151, %v255_v47  }
  0x92   : > { %v269_v57 = vpop.permute.xlu0 %268 }
  0x93   : > { %v279_v58 = vpop.permute.xlu1 %278  ;;  %v350_v8 = vmul.f32 %v1314_v4, %v269_v57 }
  0x94   : > { %v352_v6 = vmul.f32 %v1314_v4, %v279_v58 }
  0x96   : > { %v274_v60 = vpop.permute.xlu0 %273 }
  0x97   : > { %v284_v62 = vpop.permute.xlu1 %283  ;;  %v351_v13 = vmul.f32 %v1314_v4, %v274_v60 }
  0x98   : > { %v353_v11 = vmul.f32 %v1314_v4, %v284_v62 }
  0x9a   : > { %v289_v2 = vpop.permute.xlu0 %288 }
  0x9b   : > { %v294_v3 = vpop.permute.xlu1 %293  ;;  %v354_v28 = vmul.f32 %v1314_v4, %v289_v2 }
  0x9c   : > { %v355_v37 = vmul.f32 %v1314_v4, %v294_v3 }
  0x9e   : > { %v299_v5 = vpop.permute.xlu0 %298 }
  0x9f   : > { %v304_v7 = vpop.permute.xlu1 %303  ;;  %v356_v25 = vmul.f32 %v1314_v4, %v299_v5 }
  0xa0   : > { %v357_v33 = vmul.f32 %v1314_v4, %v304_v7 }
  0xa2   : > { %v309_v14 = vpop.permute.xlu0 %308 }
  0xa3   : > { %v314_v20 = vpop.permute.xlu1 %313  ;;  %v358_v53 = vmul.f32 %v1314_v4, %v309_v14 }
  0xa4   : > { %v359_v62 = vmul.f32 %v1314_v4, %v314_v20 }
  0xa6   : > { %v319_v29 = vpop.permute.xlu0 %318 }
  0xa7   : > { %v324_v38 = vpop.permute.xlu1 %323  ;;  %v360_v50 = vmul.f32 %v1314_v4, %v319_v29 }
  0xa8   : > { %v361_v58 = vmul.f32 %v1314_v4, %v324_v38 }
  0xaa   : > { %v329_v48 = vpop.permute.xlu0 %328 }
  0xab   : > { %v334_v54 = vpop.permute.xlu1 %333 }
  0xae   : > { %v339_v7 = vpop.permute.xlu0 %338 }
  0xe7   : > { %v1062_v9 = vpop.f32.mrb[0].mxu0 }
  0xe8   : > { %v438_v0 = vadd.f32 %v1062_v9, %v352_v6  ;;  %v429_v12 = vpop.f32.mrb[1].mxu0 }
  0xe9   : > { %v430_v15 = vadd.f32 %v429_v12, %v350_v8  ;;  %v1063_v16 = vpop.f32.mrb[2].mxu0 }
  0xea   : > { %v499_v17 = vadd.f32 %v1321_v10, %v438_v0  ;;  %v441_v18 = vadd.f32 %v1063_v16, %v353_v11  ;;  %v432_v19 = vpop.f32.mrb[3].mxu0  ;;  %v344_v0 = vpop.permute.xlu1 %343  ;;  %v362_v16 = vmul.f32 %v1314_v4, %v329_v48 }
  0xeb   : > { %v433_v21 = vadd.f32 %v432_v19, %v351_v13  ;;  %v497_v22 = vadd.f32 %v1321_v10, %v430_v15  ;;  %v364_v13 = vmul.f32 %v1314_v4, %v339_v7  ;;  %v365_v20 = vmul.f32 %v1314_v4, %v344_v0 }
  0xec   : > { %v500_v23 = vadd.f32 %v1321_v10, %v441_v18  ;;  %v515_v26 = vmax.f32 %v499_v17, 0.0 }
  0xed   : > { %v498_v24 = vadd.f32 %v1321_v10, %v433_v21  ;;  %v513_v31 = vmax.f32 %v497_v22, 0.0 }
  0xee   : > { %v516_v27 = vmax.f32 %v500_v23, 0.0 }
  0xef   : > { %v1066_v30 = vpop.f32.mrb[4].mxu0  ;;  %v514_v32 = vmax.f32 %v498_v24, 0.0  ;;  %v363_v24 = vmul.f32 %v1314_v4, %v334_v54 }
  0xf0   : > { %v454_v34 = vadd.f32 %v1066_v30, %v356_v25  ;;  %v445_v35 = vpop.f32.mrb[5].mxu0  ;;  %v546_v36 = vpack.c.bf16 %v516_v27, %v515_v26 }
  0xf1   : > { %v446_v39 = vadd.f32 %v445_v35, %v354_v28  ;;  %v1067_v40 = vpop.f32.mrb[6].mxu0  ;;  %v545_v41 = vpack.c.bf16 %v514_v32, %v513_v31 }
  0xf2   : > { %v503_v42 = vadd.f32 %v1321_v10, %v454_v34  ;;  %v457_v43 = vadd.f32 %v1067_v40, %v357_v33  ;;  %v448_v44 = vpop.f32.mrb[7].mxu0  ;;  %v1166_v40 = vld [vmem:[%s1392_s2 + $0x78] sm:$0xff]  }
  0xf3   : > { %v501_v45 = vadd.f32 %v1321_v10, %v446_v39  ;;  %v449_v46 = vadd.f32 %v448_v44, %v355_v37  ;;  %1092 = vmatprep.mubr.bf16.mxu1 %v545_v41  ;;  %1120 = vmatprep.subr.bf16.mxu0 %v1166_v40  ;;  %v1167_v41 = vld [vmem:[%s1392_s2 + $0x80] sm:$0xff]  }
  0xf4   : > { %v504_v47 = vadd.f32 %v1321_v10, %v457_v43  ;;  %1093 = vmatmul.mubr.bf16.vlgmr.msra.gmra.mrb[0].mxu1 %v546_v36  ;;  %v519_v51 = vmax.f32 %v503_v42, 0.0  ;;  %1121 = vmatpush3.bf16.msra.mxu0 %v1166_v40 }
  0xf5   : > { %v502_v49 = vadd.f32 %v1321_v10, %v449_v46  ;;  %v517_v55 = vmax.f32 %v501_v45, 0.0  ;;  %1122 = vmatprep.subr.bf16.mxu0 %v1167_v41 }
  0xf6   : > { %v520_v52 = vmax.f32 %v504_v47, 0.0 }
  0xf7   : > { %v518_v56 = vmax.f32 %v502_v49, 0.0  ;;  %v1070_v57 = vpop.f32.mrb[8].mxu0 }
  0xf8   : > { %v470_v59 = vadd.f32 %v1070_v57, %v360_v50  ;;  %v461_v60 = vpop.f32.mrb[9].mxu0  ;;  %v548_v61 = vpack.c.bf16 %v520_v52, %v519_v51  ;;  %1123 = vmatpush3.bf16.msra.mxu0 %v1167_v41 }
  0xf9   : > { %v462_v63 = vadd.f32 %v461_v60, %v358_v53  ;;  %v1071_v1 = vpop.f32.mrb[10].mxu0  ;;  %v547_v2 = vpack.c.bf16 %v518_v56, %v517_v55 }
  0xfa   : > { %v507_v3 = vadd.f32 %v1321_v10, %v470_v59  ;;  %v473_v5 = vadd.f32 %v1071_v1, %v361_v58  ;;  %v464_v6 = vpop.f32.mrb[11].mxu0 }
  0xfb   : > { %v505_v8 = vadd.f32 %v1321_v10, %v462_v63  ;;  %v465_v9 = vadd.f32 %v464_v6, %v359_v62  ;;  %1096 = vmatprep.mubr.bf16.mxu1 %v547_v2 }
  0xfc   : > { %v508_v11 = vadd.f32 %v1321_v10, %v473_v5  ;;  %1097 = vmatmul.mubr.bf16.gmra.mrb[4].mxu1 %v548_v61  ;;  %v523_v14 = vmax.f32 %v507_v3, 0.0 }
  0xfd   : > { %v506_v12 = vadd.f32 %v1321_v10, %v465_v9  ;;  %v521_v17 = vmax.f32 %v505_v8, 0.0 }
  0xfe   : > { %v524_v15 = vmax.f32 %v508_v11, 0.0 }
  0xff   : > { %v522_v18 = vmax.f32 %v506_v12, 0.0  ;;  %v1074_v19 = vpop.f32.mrb[12].mxu0 }
 0x100   : > { %v486_v21 = vadd.f32 %v1074_v19, %v364_v13  ;;  %v477_v22 = vpop.f32.mrb[13].mxu0  ;;  %v550_v23 = vpack.c.bf16 %v524_v15, %v523_v14 }
 0x101   : > { %v478_v25 = vadd.f32 %v477_v22, %v362_v16  ;;  %v1075_v26 = vpop.f32.mrb[14].mxu0  ;;  %v549_v27 = vpack.c.bf16 %v522_v18, %v521_v17 }
 0x102   : > { %v511_v28 = vadd.f32 %v1321_v10, %v486_v21  ;;  %v489_v29 = vadd.f32 %v1075_v26, %v365_v20  ;;  %v480_v30 = vpop.f32.mrb[15].mxu0 }
 0x103   : > { %v509_v31 = vadd.f32 %v1321_v10, %v478_v25  ;;  %v481_v32 = vadd.f32 %v480_v30, %v363_v24  ;;  %1100 = vmatprep.mubr.bf16.mxu1 %v549_v27 }
 0x104   : > { %v512_v33 = vadd.f32 %v1321_v10, %v489_v29  ;;  %1101 = vmatmul.mubr.bf16.gmra.mrb[8].mxu1 %v550_v23  ;;  %v527_v35 = vmax.f32 %v511_v28, 0.0 }
 0x105   : > { %v510_v34 = vadd.f32 %v1321_v10, %v481_v32  ;;  %v525_v37 = vmax.f32 %v509_v31, 0.0  ;;  %v997_v10 = vld [vmem:[%s1393_s3 + $0x1] ss:$0 sm:$0xff] }
 0x106   : > { %v528_v36 = vmax.f32 %v512_v33, 0.0 }
 0x107   : > { %v526_v4 = vmax.f32 %v510_v34, 0.0 }
 0x108   : > { %v552_v38 = vpack.c.bf16 %v528_v36, %v527_v35  ;;  %v1006_v36 = vld [vmem:[%s1393_s3 + $0x2] ss:$0 sm:$0xff] }
 0x109   : > { %v551_v39 = vpack.c.bf16 %v526_v4, %v525_v37 }
 0x10b   : > { %1104 = vmatprep.mubr.bf16.mxu1 %v551_v39 }
 0x10c   : > { %1105 = vmatmul.mubr.bf16.gmra.mrb[12].mxu1 %v552_v38 }
 0x1c7   : > { %v1094_v42 = vpop.f32.mrb[0].mxu1 }
 0x1c8   : > { %v649_v43 = vadd.f32 %v1094_v42, %v997_v10  ;;  %v640_v44 = vpop.f32.mrb[1].mxu1 }
 0x1c9   : > { %v641_v45 = vadd.f32 %v997_v10, %v640_v44  ;;  %v1095_v46 = vpop.f32.mrb[2].mxu1 }
 0x1ca   : > { %v652_v47 = vadd.f32 %v1095_v46, %v997_v10  ;;  %v643_v48 = vpop.f32.mrb[3].mxu1  ;;  %v705_v50 = vmax.f32 %v649_v43, 0.0 }
 0x1cb   : > { %v644_v49 = vadd.f32 %v997_v10, %v643_v48  ;;  %v703_v52 = vmax.f32 %v641_v45, 0.0 }
 0x1cc   : > { %v706_v51 = vmax.f32 %v652_v47, 0.0 }
 0x1cd   : > { %v704_v53 = vmax.f32 %v644_v49, 0.0 }
 0x1ce   : > { %v736_v54 = vpack.c.bf16 %v706_v51, %v705_v50 }
 0x1cf   : > { %v735_v55 = vpack.c.bf16 %v704_v53, %v703_v52  ;;  %v1098_v56 = vpop.f32.mrb[4].mxu1 }
 0x1d0   : > { %v665_v57 = vadd.f32 %v1098_v56, %v997_v10  ;;  %v656_v58 = vpop.f32.mrb[5].mxu1 }
 0x1d1   : > { %v657_v59 = vadd.f32 %v997_v10, %v656_v58  ;;  %v1099_v60 = vpop.f32.mrb[6].mxu1  ;;  %1124 = vmatprep.mubr.bf16.mxu0 %v735_v55 }
 0x1d2   : > { %v668_v61 = vadd.f32 %v1099_v60, %v997_v10  ;;  %v659_v62 = vpop.f32.mrb[7].mxu1  ;;  %1125 = vmatmul.mubr.bf16.vlgmr.msra.gmra.mrb[16].mxu0 %v736_v54  ;;  %v709_v1 = vmax.f32 %v665_v57, 0.0 }
 0x1d3   : > { %v660_v63 = vadd.f32 %v997_v10, %v659_v62  ;;  %v707_v3 = vmax.f32 %v657_v59, 0.0 }
 0x1d4   : > { %v710_v2 = vmax.f32 %v668_v61, 0.0 }
 0x1d5   : > { %v708_v5 = vmax.f32 %v660_v63, 0.0 }
 0x1d6   : > { %v738_v6 = vpack.c.bf16 %v710_v2, %v709_v1 }
 0x1d7   : > { %v737_v7 = vpack.c.bf16 %v708_v5, %v707_v3  ;;  %v1102_v8 = vpop.f32.mrb[8].mxu1 }
 0x1d8   : > { %v681_v9 = vadd.f32 %v1102_v8, %v997_v10  ;;  %v672_v11 = vpop.f32.mrb[9].mxu1 }
 0x1d9   : > { %v673_v0 = vadd.f32 %v997_v10, %v672_v11  ;;  %v1103_v12 = vpop.f32.mrb[10].mxu1  ;;  %1128 = vmatprep.mubr.bf16.mxu0 %v737_v7 }
 0x1da   : > { %v684_v13 = vadd.f32 %v1103_v12, %v997_v10  ;;  %v675_v14 = vpop.f32.mrb[11].mxu1  ;;  %1129 = vmatmul.mubr.bf16.gmra.mrb[20].mxu0 %v738_v6  ;;  %v713_v16 = vmax.f32 %v681_v9, 0.0 }
 0x1db   : > { %v676_v15 = vadd.f32 %v997_v10, %v675_v14  ;;  %v711_v18 = vmax.f32 %v673_v0, 0.0 }
 0x1dc   : > { %v714_v17 = vmax.f32 %v684_v13, 0.0 }
 0x1dd   : > { %v712_v19 = vmax.f32 %v676_v15, 0.0 }
 0x1de   : > { %v740_v20 = vpack.c.bf16 %v714_v17, %v713_v16 }
 0x1df   : > { %v739_v21 = vpack.c.bf16 %v712_v19, %v711_v18  ;;  %v1106_v22 = vpop.f32.mrb[12].mxu1 }
 0x1e0   : > { %v697_v23 = vadd.f32 %v1106_v22, %v997_v10  ;;  %v688_v24 = vpop.f32.mrb[13].mxu1 }
 0x1e1   : > { %v689_v25 = vadd.f32 %v997_v10, %v688_v24  ;;  %v1107_v26 = vpop.f32.mrb[14].mxu1  ;;  %1132 = vmatprep.mubr.bf16.mxu0 %v739_v21 }
 0x1e2   : > { %v700_v27 = vadd.f32 %v1107_v26, %v997_v10  ;;  %v691_v28 = vpop.f32.mrb[15].mxu1  ;;  %1133 = vmatmul.mubr.bf16.gmra.mrb[24].mxu0 %v740_v20  ;;  %v717_v30 = vmax.f32 %v697_v23, 0.0 }
 0x1e3   : > { %v692_v29 = vadd.f32 %v997_v10, %v691_v28  ;;  %v715_v32 = vmax.f32 %v689_v25, 0.0 }
 0x1e4   : > { %v718_v31 = vmax.f32 %v700_v27, 0.0 }
 0x1e5   : > { %v716_v33 = vmax.f32 %v692_v29, 0.0 }
 0x1e6   : > { %v742_v34 = vpack.c.bf16 %v718_v31, %v717_v30 }
 0x1e7   : > { %v741_v35 = vpack.c.bf16 %v716_v33, %v715_v32 }
 0x1e9   : > { %1136 = vmatprep.mubr.bf16.mxu0 %v741_v35 }
 0x1ea   : > { %1137 = vmatmul.mubr.bf16.gmra.mrb[28].mxu0 %v742_v34 }
 0x2a5   : > { %v1126_v37 = vpop.f32.mrb[16].mxu0 }
 0x2a6   : > { %v839_v4 = vadd.f32 %v1126_v37, %v1006_v36  ;;  %v830_v38 = vpop.f32.mrb[17].mxu0 }
 0x2a7   : > { %v831_v39 = vadd.f32 %v1006_v36, %v830_v38  ;;  %v1127_v40 = vpop.f32.mrb[18].mxu0 }
 0x2a8   : > { %895 = vst [vmem:[%s1369_s18 + $0x10] sm:$0xff] %v839_v4  ;;  %v842_v41 = vadd.f32 %v1127_v40, %v1006_v36  ;;  %v833_v10 = vpop.f32.mrb[19].mxu0 }
 0x2a9   : > { %893 = vst [vmem:[%s1369_s18] sm:$0xff] %v831_v39  ;;  %v834_v42 = vadd.f32 %v1006_v36, %v833_v10 }
 0x2aa   : > { %896 = vst [vmem:[%s1369_s18 + $0x18] sm:$0xff] %v842_v41 }
 0x2ab   : > { %894 = vst [vmem:[%s1369_s18 + $0x8] sm:$0xff] %v834_v42 }
 0x2ad   : > { %v1130_v43 = vpop.f32.mrb[20].mxu0 }
 0x2ae   : > { %v855_v44 = vadd.f32 %v1130_v43, %v1006_v36  ;;  %v846_v45 = vpop.f32.mrb[21].mxu0 }
 0x2af   : > { %v847_v46 = vadd.f32 %v1006_v36, %v846_v45  ;;  %v1131_v47 = vpop.f32.mrb[22].mxu0 }
 0x2b0   : > { %899 = vst [vmem:[%s1369_s18 + $0x30] sm:$0xff] %v855_v44  ;;  %v858_v48 = vadd.f32 %v1131_v47, %v1006_v36  ;;  %v849_v49 = vpop.f32.mrb[23].mxu0 }
 0x2b1   : > { %897 = vst [vmem:[%s1369_s18 + $0x20] sm:$0xff] %v847_v46  ;;  %v850_v50 = vadd.f32 %v1006_v36, %v849_v49 }
 0x2b2   : > { %900 = vst [vmem:[%s1369_s18 + $0x38] sm:$0xff] %v858_v48 }
 0x2b3   : > { %898 = vst [vmem:[%s1369_s18 + $0x28] sm:$0xff] %v850_v50 }
 0x2b5   : > { %v1134_v51 = vpop.f32.mrb[24].mxu0 }
 0x2b6   : > { %v871_v52 = vadd.f32 %v1134_v51, %v1006_v36  ;;  %v862_v53 = vpop.f32.mrb[25].mxu0 }
 0x2b7   : > { %v863_v54 = vadd.f32 %v1006_v36, %v862_v53  ;;  %v1135_v55 = vpop.f32.mrb[26].mxu0 }
 0x2b8   : > { %903 = vst [vmem:[%s1369_s18 + $0x50] sm:$0xff] %v871_v52  ;;  %v874_v56 = vadd.f32 %v1135_v55, %v1006_v36  ;;  %v865_v57 = vpop.f32.mrb[27].mxu0 }
 0x2b9   : > { %901 = vst [vmem:[%s1369_s18 + $0x40] sm:$0xff] %v863_v54  ;;  %v866_v58 = vadd.f32 %v1006_v36, %v865_v57 }
 0x2ba   : > { %904 = vst [vmem:[%s1369_s18 + $0x58] sm:$0xff] %v874_v56 }
 0x2bb   : > { %902 = vst [vmem:[%s1369_s18 + $0x48] sm:$0xff] %v866_v58 }
 0x2bd   : > { %v1138_v59 = vpop.f32.mrb[28].mxu0 }
 0x2be   : > { %v887_v60 = vadd.f32 %v1138_v59, %v1006_v36  ;;  %v878_v61 = vpop.f32.mrb[29].mxu0 }
 0x2bf   : > { %v879_v62 = vadd.f32 %v1006_v36, %v878_v61  ;;  %v1139_v63 = vpop.f32.mrb[30].mxu0 }
 0x2c0   : > { %907 = vst [vmem:[%s1369_s18 + $0x70] sm:$0xff] %v887_v60  ;;  %v890_v1 = vadd.f32 %v1139_v63, %v1006_v36  ;;  %v881_v2 = vpop.f32.mrb[31].mxu0 }
 0x2c1   : > { %905 = vst [vmem:[%s1369_s18 + $0x60] sm:$0xff] %v879_v62  ;;  %v882_v3 = vadd.f32 %v1006_v36, %v881_v2 }
 0x2c2   : > { %908 = vst [vmem:[%s1369_s18 + $0x78] sm:$0xff] %v890_v1 }
 0x2c3   : > { %906 = vst [vmem:[%s1369_s18 + $0x68] sm:$0xff] %v882_v3 }
 0x2c4 PF: > { %s14_s15 = sadd.s32 1, %s1174_s15  }
 0x2c5   : > { %p11_p4 = scmp.ge.s32.totalorder %s14_s15, 4  }
 0x2c7   :  { %13 = sbr.rel (!%p11_p4) target bundleno = 1 (0x1), region = 69 }

</bundles_post_ra>
